<compile_context>
chip_gen: v5e
topology: v5e:2x2
jax: 0.10.0
libtpu: 0.0.40
codegen_flags: <defaults>
</compile_context>

<pallas_src>
import jax
import jax.numpy as jnp
from jax.experimental import pallas as pl
from jax.experimental.pallas import tpu as pltpu


def _hytana_kernel(x_ref, alpha_ref, beta_ref, o_ref):
    # x_ref:     (r_tile, cols_padded)  f32
    # alpha_ref: (r_tile, 1)            f32   (broadcast along lanes)
    # beta_ref:  (r_tile, 1)            f32
    x = x_ref[...]
    a = alpha_ref[...]
    b = beta_ref[...]
    t = jnp.tanh(a + b * x)              # EUP transcendental (separate slot)
    o_ref[...] = (x * 0.5) * (1.0 + t)


def _round_up(v, m):
    return -(-v // m) * m


def phytana_forward(x_nchw, weight, num_parameters):
    """x_nchw: (N, C, H, W) float; weight: (num_parameters, 2)."""
    N, C, H, W = x_nchw.shape
    rows = N * C
    cols = H * W
    dtype = x_nchw.dtype
    itemsize = jnp.dtype(dtype).itemsize

    # Glue: per-row alpha/beta (matches the PyTorch per-channel unbind loop).
    if num_parameters > 1:
        assert C == num_parameters, (
            "The number of parameters should equal the number of channel")
        alpha = jnp.tile(weight[:, 0].astype(dtype), N)   # (N*C,), row = n*C + c
        beta = jnp.tile(weight[:, 1].astype(dtype), N)
    else:
        alpha = jnp.full((rows,), weight[0, 0], dtype=dtype)
        beta = jnp.full((rows,), weight[0, 1], dtype=dtype)

    x2d = x_nchw.reshape(rows, cols)

    # Lane-dense last dim: pad H*W up to a multiple of 128 (zeros are inert:
    # hytana(0, a, b) contributes nothing and is sliced away afterwards).
    cols_padded = max(_round_up(cols, 128), 128)

    # Row tile: target ~2 MiB per x-block.  With x + out double-buffered this
    # is ~8 MiB of VMEM -> fits the default scoped limit on v5e (16 MiB),
    # v6e (32 MiB) and v7x (32 MiB scoped / 64 MiB physical).
    target_block_bytes = 2 * 1024 * 1024
    r_tile = max(8, (target_block_bytes // (cols_padded * itemsize)) // 8 * 8)
    r_tile = min(r_tile, _round_up(rows, 8))
    rows_padded = _round_up(rows, r_tile)

    if rows_padded != rows or cols_padded != cols:
        x2d = jnp.pad(x2d, ((0, rows_padded - rows), (0, cols_padded - cols)))
    if rows_padded != rows:
        alpha = jnp.pad(alpha, (0, rows_padded - rows))
        beta = jnp.pad(beta, (0, rows_padded - rows))

    alpha2d = alpha.reshape(rows_padded, 1)
    beta2d = beta.reshape(rows_padded, 1)

    grid = (rows_padded // r_tile,)
    n_elem = rows_padded * cols_padded
    bytes_accessed = (2 * n_elem + 2 * rows_padded) * itemsize

    out = pl.pallas_call(
        _hytana_kernel,
        out_shape=jax.ShapeDtypeStruct((rows_padded, cols_padded), dtype),
        grid_spec=pl.GridSpec(
            grid=grid,
            in_specs=[
                pl.BlockSpec((r_tile, cols_padded), lambda i: (i, 0)),
                pl.BlockSpec((r_tile, 1), lambda i: (i, 0)),
                pl.BlockSpec((r_tile, 1), lambda i: (i, 0)),
            ],
            out_specs=pl.BlockSpec((r_tile, cols_padded), lambda i: (i, 0)),
        ),
        compiler_params=pltpu.CompilerParams(
            dimension_semantics=("parallel",)),
        cost_estimate=pl.CostEstimate(
            flops=5 * n_elem,
            transcendentals=n_elem,
            bytes_accessed=bytes_accessed),
    )(x2d, alpha2d, beta2d)

    if rows_padded != rows or cols_padded != cols:
        out = out[:rows, :cols]
    return out.reshape(N, C, H, W)


if __name__ == "__main__":
    # Small shapes consistent with the module's NCHW forward.
    N, C, H, W = 2, 4, 16, 16
    num_parameters = C  # exercise the per-channel branch

    key = jax.random.PRNGKey(0)
    x = jax.random.normal(key, (N, C, H, W), dtype=jnp.float32)

    # Deterministic parameter init, mirroring torch.Tensor([init] * num_parameters)
    init = (0.303, 0.632)
    weight = jnp.array([init] * num_parameters, dtype=jnp.float32)  # (C, 2)

    y = jax.block_until_ready(phytana_forward(x, weight, num_parameters))

    # Pure-JAX reference check (per-channel branch).
    alpha = weight[:, 0].reshape(1, C, 1, 1)
    beta = weight[:, 1].reshape(1, C, 1, 1)
    y_ref = x / 2.0 * (1.0 + jnp.tanh(alpha + beta * x))
    assert jnp.allclose(y, y_ref, atol=1e-5, rtol=1e-5), "per-channel mismatch"

    # Also exercise the num_parameters == 1 branch.
    w1 = jnp.array([init], dtype=jnp.float32)  # (1, 2)
    y1 = jax.block_until_ready(phytana_forward(x, w1, 1))
    y1_ref = x / 2.0 * (1.0 + jnp.tanh(w1[0, 0] + w1[0, 1] * x))
    assert jnp.allclose(y1, y1_ref, atol=1e-5, rtol=1e-5), "shared-param mismatch"

    print("KERNEL_OK")
</pallas_src>

<mosaic_0001>
module attributes {stable_mosaic.version = 11 : i64} {
  func.func @_hytana_kernel(%arg0: i32, %arg1: memref<8x256xf32, #tpu.memory_space<vmem>>, %arg2: memref<8x1xf32, #tpu.memory_space<vmem>>, %arg3: memref<8x1xf32, #tpu.memory_space<vmem>>, %arg4: memref<8x256xf32, #tpu.memory_space<vmem>>) attributes {dimension_semantics = [#tpu.dimension_semantics<parallel>], iteration_bounds = array<i64: 1>, scalar_prefetch = 0 : i64, scratch_operands = 0 : i64, tpu.core_type = #tpu.core_type<tc>, window_params = [{transform_indices = @transform_0, window_bounds = array<i64: 8, 256>}, {transform_indices = @transform_1, window_bounds = array<i64: 8, 1>}, {transform_indices = @transform_2, window_bounds = array<i64: 8, 1>}, {transform_indices = @transform_3, window_bounds = array<i64: 8, 256>}]} {
    %c0 = arith.constant 0 : index
    %c0_0 = arith.constant 0 : index
    %0 = vector.load %arg1[%c0, %c0_0] : memref<8x256xf32, #tpu.memory_space<vmem>>, vector<8x256xf32>
    %c0_1 = arith.constant 0 : index
    %c0_2 = arith.constant 0 : index
    %1 = vector.load %arg2[%c0_1, %c0_2] : memref<8x1xf32, #tpu.memory_space<vmem>>, vector<8x1xf32>
    %c0_3 = arith.constant 0 : index
    %c0_4 = arith.constant 0 : index
    %2 = vector.load %arg3[%c0_3, %c0_4] : memref<8x1xf32, #tpu.memory_space<vmem>>, vector<8x1xf32>
    %3 = vector.broadcast %2 : vector<8x1xf32> to vector<8x256xf32>
    %4 = arith.mulf %3, %0 : vector<8x256xf32>
    %5 = vector.broadcast %1 : vector<8x1xf32> to vector<8x256xf32>
    %6 = arith.addf %5, %4 : vector<8x256xf32>
    %7 = math.tanh %6 : vector<8x256xf32>
    %cst = arith.constant 5.000000e-01 : f32
    %8 = vector.broadcast %cst : f32 to vector<8x256xf32>
    %9 = arith.mulf %0, %8 : vector<8x256xf32>
    %cst_5 = arith.constant 1.000000e+00 : f32
    %10 = vector.broadcast %cst_5 : f32 to vector<8x256xf32>
    %11 = arith.addf %10, %7 : vector<8x256xf32>
    %12 = arith.mulf %9, %11 : vector<8x256xf32>
    %c0_6 = arith.constant 0 : index
    %c0_7 = arith.constant 0 : index
    %13 = vector.load %arg4[%c0_6, %c0_7] : memref<8x256xf32, #tpu.memory_space<vmem>>, vector<8x256xf32>
    tpu.vector_store %arg4[%c0_6, %c0_7], %12 {strides = array<i32>} : memref<8x256xf32, #tpu.memory_space<vmem>>, vector<8x256xf32>,
    return
  }
  func.func @transform_0(%arg0: i32) -> (i32, i32) {
    %c0_i32 = arith.constant 0 : i32
    %c0_i32_0 = arith.constant 0 : i32
    return %arg0, %c0_i32 : i32, i32
  }
  func.func @transform_1(%arg0: i32) -> (i32, i32) {
    %c0_i32 = arith.constant 0 : i32
    %c0_i32_0 = arith.constant 0 : i32
    return %arg0, %c0_i32 : i32, i32
  }
  func.func @transform_2(%arg0: i32) -> (i32, i32) {
    %c0_i32 = arith.constant 0 : i32
    %c0_i32_0 = arith.constant 0 : i32
    return %arg0, %c0_i32 : i32, i32
  }
  func.func @transform_3(%arg0: i32) -> (i32, i32) {
    %c0_i32 = arith.constant 0 : i32
    %c0_i32_0 = arith.constant 0 : i32
    return %arg0, %c0_i32 : i32, i32
  }
}

</mosaic_0001>

<bundles_post_ra>
// kernel: tpu_custom_call.1
= control target key start
LH: loop header
LB: loop body
LE: loop exit
PB: predicated region body
PF: predicated region fallthrough
CT: control target
= control target key end

     0   :  { %s129_s0 = inlined_call_operand.vmem [shape: f32[8,256], index: 0, kind: input, shape index: {}]   ;;  %s130_s1 = inlined_call_operand.vmem [shape: f32[8,1], index: 1, kind: input, shape index: {}]   ;;  %s131_s2 = inlined_call_operand.vmem [shape: f32[8,1], index: 2, kind: input, shape index: {}]   ;;  %s132_s3 = inlined_call_operand.hbm [shape: f32[8,256], index: 3, kind: output, shape index: {}]  }
   0x1   :  { %v18_v0 = vld [vmem:[%s131_s2] sm:$0xff] }
   0x2   :  { %8 = vsyncpa [#allocation3], 0  ;;  %v92_v1 = vmov 0   ;;  %v17_v2 = vld [vmem:[%s130_s1] sm:$0xff]  ;;  %v16_v5 = vld [vmem:[%s129_s0 + $0x8] sm:$0xff]  ;;  %s93_s1 = smov [#allocation2]  }
   0x3   :  { %61 = vset.pattern.permute.xlu0 %v92_v1  ;;  %v15_v4 = vld [vmem:[%s129_s0] sm:$0xff]  ;;  %v36_v13 = vmul.f32 0.5, %v16_v5  ;;  %s48_s2 = sshll.u32 %s93_s1, 4  ;;  %s50_s22 = sshll.u32 %s132_s3, 4  ;;  %s49_s2 = int_to_ptr.vmem [resolvable:$true] %s48_s2  ;;  %s51_s22 = int_to_ptr.hbm [resolvable:$true] %s50_s22 }
   0x4   :  { %21 = vperm.xlu0 %61, %v18_v0   ;;  %v35_v11 = vmul.f32 0.5, %v15_v4 }
   0xc   :  { %28 = vperm.xlu0 %61, %v17_v2  }
  0x76   :  { %v22_v3 = vpop.permute.xlu0 %21 }
  0x77   :  { %v24_v6 = vmul.f32 %v22_v3, %v15_v4  ;;  %v25_v7 = vmul.f32 %v22_v3, %v16_v5 }
  0x7e   :  { %v29_v8 = vpop.permute.xlu0 %28 }
  0x7f   :  { %v31_v9 = vadd.f32 %v29_v8, %v24_v6  ;;  %v32_v10 = vadd.f32 %v29_v8, %v25_v7 }
  0x81   :  { %62 = vtanh.f32 %v31_v9 }
  0x82   :  { %64 = vtanh.f32 %v32_v10 }
  0x87   :  { %v63_v12 = vpop.eup %62 }
  0x88   :  { %v65_v14 = vpop.eup %64  ;;  %v37_v15 = vadd.f32 1.0, %v63_v12 }
  0x89   :  { %v38_v16 = vadd.f32 1.0, %v65_v14 }
  0x8a   :  { %v39_v17 = vmul.f32 %v37_v15, %v35_v11 }
  0x8b   :  { %v40_v18 = vmul.f32 %v38_v16, %v36_v13 }
  0x8c   :  { %41 = vst [vmem:[#allocation2] sm:$0xff] %v39_v17 }
  0x8d   :  { %42 = vst [vmem:[#allocation2 + $0x8] sm:$0xff] %v40_v18 }
  0x8e   :  { %53 = dma.vmem_to_hbm [thread:$0]  %s49_s2, 256, %s51_s22, [#allocation3]  }
  0x8f   :  { %90 = dma.done.wait [#allocation3], 256  }
  0x90   :  { %91 = vsyncadd [#allocation3], 4294967040 }
  0x91   :  { %58 = vsyncpa [#allocation3], 1 }

</bundles_post_ra>
